<compile_context>
chip_gen: v6e
topology: v6e:2x2x1
jax: 0.10.0
libtpu: 0.0.40
codegen_flags: <defaults>
</compile_context>

<pallas_src>
import functools

import jax
import jax.numpy as jnp
from jax.experimental import pallas as pl
from jax.experimental.pallas import tpu as pltpu


def _highpass_kernel(x_ref, o_ref, *, W, HW, inv_w_hpf):
    # x_ref / o_ref: (B, H*W) -- each row is one (n, c) plane flattened row-major.
    x = x_ref[...].astype(jnp.float32)                         # (B, HW)

    # Border masks from a single lane-axis iota, broadcast across sublanes.
    lane = jax.lax.broadcasted_iota(jnp.int32, (1, HW), 1)     # flattened plane index
    col = (lane & (W - 1)) if (W & (W - 1)) == 0 else (lane % W)
    not_first_col = col != 0
    not_last_col = col != W - 1
    not_first_row = lane >= W
    not_last_row = lane < HW - W

    # Horizontal neighbors via lane rolls (non-negative shifts: -k == HW - k).
    # Wrap-around / cross-row leakage lands only on masked (zero-padded) positions.
    left = jnp.where(not_first_col, pltpu.roll(x, shift=1, axis=1), 0.0)
    right = jnp.where(not_last_col, pltpu.roll(x, shift=HW - 1, axis=1), 0.0)
    rowsum = x + left + right                                   # 3-tap row sum

    # Vertical neighbors: +/-W along the flattened axis; mask first/last rows.
    up = jnp.where(not_first_row, pltpu.roll(rowsum, shift=W, axis=1), 0.0)
    down = jnp.where(not_last_row, pltpu.roll(rowsum, shift=HW - W, axis=1), 0.0)
    boxsum = rowsum + up + down                                 # 3x3 box sum (zero padded)

    # 8*center - 8 neighbors == 9*center - 3x3 box sum (exact algebra).
    o_ref[...] = ((9.0 * x - boxsum) * inv_w_hpf).astype(o_ref.dtype)


def _pick_block_planes(num_planes: int, plane_bytes: int, *,
                       sublane: int = 8,
                       target_bytes: int = 2 << 20,
                       min_steps: int = 8) -> int:
    """How many (n, c) planes to process per grid step.

    Largest multiple of `sublane` whose input block fits `target_bytes`, capped
    so that (when the problem is large enough) there are at least `min_steps`
    grid steps -- the pipeline then overlaps prefetch/writeback with compute and
    the 'parallel' grid axis can shard across TensorCores (2 per chip on v7x).
    The grid uses cdiv, so B does NOT need to divide num_planes.
    """
    b = max(sublane, (target_bytes // max(plane_bytes, 1)) // sublane * sublane)
    b = min(b, pl.cdiv(num_planes, sublane) * sublane)          # don't exceed the array
    if num_planes >= min_steps * sublane:
        b = min(b, max(sublane, (num_planes // min_steps) // sublane * sublane))
    return b


def highpass(x, w_hpf=1.0):
    """x: (N, C, H, W) -> (N, C, H, W), depthwise 3x3 high-pass (padding=1, groups=C)."""
    N, C, H, W = x.shape
    P = N * C
    HW = H * W

    # TODO(synk): planes larger than ~1-2 MiB (e.g. 512x512 f32) need a halo-tiled
    # split along H *before* the flatten to stay within v7x's 64 MiB VMEM; and when
    # HW % 128 != 0, packing several planes per lane row would recover the
    # proportional lane-padding DMA waste. Neither is needed at typical sizes.
    xf = x.reshape(P, HW)   # contiguous, free reshape: one lane-dense row per plane

    itemsize = x.dtype.itemsize
    sublane = {4: 8, 2: 16, 1: 32}.get(itemsize, 8)
    B = _pick_block_planes(P, HW * itemsize, sublane=sublane)
    grid = (pl.cdiv(P, B),)

    # Explicit VMEM budget: 2x double-buffered in + 2x double-buffered out (I/O
    # dtype) plus ~6 full-tile f32 temporaries (x, rowsum, rolls, masks), with
    # headroom; clamped so it stays legal on every generation (v7x: 64 MiB phys).
    blk_io_bytes = B * HW * itemsize
    blk_f32_bytes = B * HW * 4
    vmem_limit = int(min(max(4 * blk_io_bytes + 6 * blk_f32_bytes + (4 << 20),
                             16 << 20), 32 << 20))

    kernel = functools.partial(
        _highpass_kernel, W=W, HW=HW, inv_w_hpf=1.0 / float(w_hpf))

    out = pl.pallas_call(
        kernel,
        out_shape=jax.ShapeDtypeStruct((P, HW), x.dtype),
        grid_spec=pltpu.PrefetchScalarGridSpec(
            num_scalar_prefetch=0,
            grid=grid,
            in_specs=[pl.BlockSpec((B, HW), lambda i: (i, 0))],
            out_specs=pl.BlockSpec((B, HW), lambda i: (i, 0)),
        ),
        compiler_params=pltpu.CompilerParams(
            dimension_semantics=("parallel",),
            vmem_limit_bytes=vmem_limit),
        cost_estimate=pl.CostEstimate(
            flops=10 * P * HW,
            transcendentals=0,
            bytes_accessed=2 * P * HW * itemsize),
    )(xf)

    return out.reshape(N, C, H, W)


def _reference(x, w_hpf=1.0):
    # Pure-JAX reference: grouped conv, groups = C (matches torch F.conv2d semantics).
    N, C, H, W = x.shape
    filt = jnp.array([[-1., -1., -1.],
                      [-1., 8., -1.],
                      [-1., -1., -1.]], dtype=x.dtype) / w_hpf
    kernel = jnp.broadcast_to(filt[None, None, :, :], (C, 1, 3, 3))
    return jax.lax.conv_general_dilated(
        x, kernel, window_strides=(1, 1), padding=((1, 1), (1, 1)),
        dimension_numbers=("NCHW", "OIHW", "NCHW"),
        feature_group_count=C)


if __name__ == "__main__":
    key = jax.random.PRNGKey(0)
    N, C, H, W = 2, 4, 16, 16
    w_hpf = 1.0  # deterministic "parameter" from __init__(w_hpf, device)
    x = jax.random.normal(key, (N, C, H, W), dtype=jnp.float32)

    out = jax.block_until_ready(highpass(x, w_hpf))
    ref = jax.block_until_ready(_reference(x, w_hpf))

    assert out.shape == (N, C, H, W)
    assert jnp.allclose(out, ref, atol=1e-4, rtol=1e-4), "mismatch vs reference conv"

    print("KERNEL_OK")
</pallas_src>

<mosaic_0001>
module attributes {stable_mosaic.version = 11 : i64} {
  func.func @_highpass_kernel(%arg0: i32, %arg1: memref<8x256xf32, #tpu.memory_space<vmem>>, %arg2: memref<8x256xf32, #tpu.memory_space<vmem>>) attributes {dimension_semantics = [#tpu.dimension_semantics<parallel>], iteration_bounds = array<i64: 1>, scalar_prefetch = 0 : i64, scratch_operands = 0 : i64, tpu.core_type = #tpu.core_type<tc>, window_params = [{transform_indices = @transform_0, window_bounds = array<i64: 8, 256>}, {transform_indices = @transform_1, window_bounds = array<i64: 8, 256>}]} {
    %c0 = arith.constant 0 : index
    %c0_0 = arith.constant 0 : index
    %0 = vector.load %arg1[%c0, %c0_0] : memref<8x256xf32, #tpu.memory_space<vmem>>, vector<8x256xf32>
    %1 = tpu.iota {dimensions = array<i32: 1>} : vector<1x256xi32>
    %c15_i32 = arith.constant 15 : i32
    %2 = vector.broadcast %c15_i32 : i32 to vector<1x256xi32>
    %3 = arith.andi %1, %2 : vector<1x256xi32>
    %c0_i32 = arith.constant 0 : i32
    %4 = vector.broadcast %c0_i32 : i32 to vector<1x256xi32>
    %5 = arith.cmpi ne, %3, %4 : vector<1x256xi32>
    %c15_i32_1 = arith.constant 15 : i32
    %6 = vector.broadcast %c15_i32_1 : i32 to vector<1x256xi32>
    %7 = arith.cmpi ne, %3, %6 : vector<1x256xi32>
    %c16_i32 = arith.constant 16 : i32
    %8 = vector.broadcast %c16_i32 : i32 to vector<1x256xi32>
    %9 = arith.cmpi sge, %1, %8 : vector<1x256xi32>
    %c240_i32 = arith.constant 240 : i32
    %10 = vector.broadcast %c240_i32 : i32 to vector<1x256xi32>
    %11 = arith.cmpi slt, %1, %10 : vector<1x256xi32>
    %c1_i32 = arith.constant 1 : i32
    %12 = tpu.dynamic_rotate %0 by %c1_i32 dim 1 : vector<8x256xf32>, i32 -> vector<8x256xf32>
    %cst = arith.constant 0.000000e+00 : f32
    %13 = vector.shape_cast %5 : vector<1x256xi1> to vector<1x256xi1>
    %14 = vector.broadcast %13 : vector<1x256xi1> to vector<8x256xi1>
    %15 = vector.broadcast %cst : f32 to vector<8x256xf32>
    %16 = arith.select %14, %12, %15 : vector<8x256xi1>, vector<8x256xf32>
    %c255_i32 = arith.constant 255 : i32
    %17 = tpu.dynamic_rotate %0 by %c255_i32 dim 1 : vector<8x256xf32>, i32 -> vector<8x256xf32>
    %cst_2 = arith.constant 0.000000e+00 : f32
    %18 = vector.shape_cast %7 : vector<1x256xi1> to vector<1x256xi1>
    %19 = vector.broadcast %18 : vector<1x256xi1> to vector<8x256xi1>
    %20 = vector.broadcast %cst_2 : f32 to vector<8x256xf32>
    %21 = arith.select %19, %17, %20 : vector<8x256xi1>, vector<8x256xf32>
    %22 = arith.addf %0, %16 : vector<8x256xf32>
    %23 = arith.addf %22, %21 : vector<8x256xf32>
    %c16_i32_3 = arith.constant 16 : i32
    %24 = tpu.dynamic_rotate %23 by %c16_i32_3 dim 1 : vector<8x256xf32>, i32 -> vector<8x256xf32>
    %cst_4 = arith.constant 0.000000e+00 : f32
    %25 = vector.shape_cast %9 : vector<1x256xi1> to vector<1x256xi1>
    %26 = vector.broadcast %25 : vector<1x256xi1> to vector<8x256xi1>
    %27 = vector.broadcast %cst_4 : f32 to vector<8x256xf32>
    %28 = arith.select %26, %24, %27 : vector<8x256xi1>, vector<8x256xf32>
    %c240_i32_5 = arith.constant 240 : i32
    %29 = tpu.dynamic_rotate %23 by %c240_i32_5 dim 1 : vector<8x256xf32>, i32 -> vector<8x256xf32>
    %cst_6 = arith.constant 0.000000e+00 : f32
    %30 = vector.shape_cast %11 : vector<1x256xi1> to vector<1x256xi1>
    %31 = vector.broadcast %30 : vector<1x256xi1> to vector<8x256xi1>
    %32 = vector.broadcast %cst_6 : f32 to vector<8x256xf32>
    %33 = arith.select %31, %29, %32 : vector<8x256xi1>, vector<8x256xf32>
    %34 = arith.addf %23, %28 : vector<8x256xf32>
    %35 = arith.addf %34, %33 : vector<8x256xf32>
    %cst_7 = arith.constant 9.000000e+00 : f32
    %36 = vector.broadcast %cst_7 : f32 to vector<8x256xf32>
    %37 = arith.mulf %36, %0 : vector<8x256xf32>
    %38 = arith.subf %37, %35 : vector<8x256xf32>
    %cst_8 = arith.constant 1.000000e+00 : f32
    %39 = vector.broadcast %cst_8 : f32 to vector<8x256xf32>
    %40 = arith.mulf %38, %39 : vector<8x256xf32>
    %c0_9 = arith.constant 0 : index
    %c0_10 = arith.constant 0 : index
    %41 = vector.load %arg2[%c0_9, %c0_10] : memref<8x256xf32, #tpu.memory_space<vmem>>, vector<8x256xf32>
    tpu.vector_store %arg2[%c0_9, %c0_10], %40 {strides = array<i32>} : memref<8x256xf32, #tpu.memory_space<vmem>>, vector<8x256xf32>,
    return
  }
  func.func @transform_0(%arg0: i32) -> (i32, i32) {
    %c0_i32 = arith.constant 0 : i32
    %c0_i32_0 = arith.constant 0 : i32
    return %arg0, %c0_i32 : i32, i32
  }
  func.func @transform_1(%arg0: i32) -> (i32, i32) {
    %c0_i32 = arith.constant 0 : i32
    %c0_i32_0 = arith.constant 0 : i32
    return %arg0, %c0_i32 : i32, i32
  }
}

</mosaic_0001>

<bundles_post_ra>
// kernel: tpu_custom_call.1
= control target key start
LH: loop header
LB: loop body
LE: loop exit
PB: predicated region body
PF: predicated region fallthrough
CT: control target
= control target key end

     0   :  { %6 = vsyncpa [#allocation3], 0  ;;  %s189_s0 = inlined_call_operand.hbm [shape: f32[8,256], index: 0, kind: input, shape index: {}]   ;;  %s190_s1 = inlined_call_operand.hbm [shape: f32[8,256], index: 1, kind: output, shape index: {}]  }
   0x1   :  { %7 = vsyncpa [#allocation4], 0  ;;  %s167_s6 = smov [#allocation2]  }
   0x2   :  { %s14_s7 = sshll.u32 %s167_s6, 4  ;;  %s15_s7 = int_to_ptr.vmem [resolvable:$true] %s14_s7 }
   0x3   :  { %s131_s8 = scalar_lea.vmem %s15_s7, 256  ;;  %p136_p1 = scmp.lt.s32.totalorder %s15_s7, %s15_s7 }
   0x4   :  { %p132_p0 = scmp.ne.s32.totalorder %s15_s7, %s131_s8  ;;  %p137_p2 = scmp.lt.s32.totalorder %s131_s8, %s131_s8 }
   0x6   :  { %p138_p3 = por %p137_p2, %p136_p1 }
   0x8   :  { %p139_p4 = pnand %p138_p3, %p132_p0 }
   0xa   :  { %142 = shalt.err (!%p139_p4)
}
   0xb   :  { %17 = dma.hbm_to_vmem [thread:$0]  %s189_s0, 256, %s15_s7, [#allocation3]  }
   0xc   :  { %163 = dma.done.wait [#allocation3], 256  }
   0xd   :  { %164 = vsyncadd [#allocation3], 4294967040  ;;  %v21_v0 = vld [vmem:[#allocation2] sm:$0xff]  ;;  %s168_s11 = smov 127   ;;  %s169_s12 = smov 1   ;;  %v22_v1 = vld [vmem:[#allocation2 + $0x8] sm:$0xff]  ;;  %v23_v2 = vlaneseq }
   0xe   :  { %49 = vrot.lane.b32.xlu1 %v21_v0, %s168_s11  ;;  %36 = vrot.lane.b32.xlu0 %v21_v0, %s169_s12  ;;  %s170_s0 = smov 16   ;;  %s171_s13 = smov 112   ;;  %v96_v31 = vmul.f32 9.0, %v21_v0  ;;  %v97_v35 = vmul.f32 9.0, %v22_v1 }
   0xf   :  { %v24_v3 = vand.u32 127, %v23_v2  ;;  %s172_s14 = smov [#allocation5]  }
  0x10   :  { %s108_s15 = sshll.u32 %s172_s14, 4  ;;  %s109_s15 = int_to_ptr.vmem [resolvable:$true] %s108_s15 }
  0x11   :  { %v25_v4 = vadd.s32 128, %v24_v3  ;;  %v26_v5 = vand.u32 15, %v24_v3  ;;  %vm53_vm0 = vcmp.lt.s32.totalorder %v24_v3, 127  ;;  %vm40_vm1 = vcmp.lt.s32.totalorder %v24_v3, 1  ;;  %s143_s16 = scalar_lea.vmem %s109_s15, 256  ;;  %p148_p6 = scmp.lt.s32.totalorder %s109_s15, %s109_s15 }
  0x12   :  { %51 = vrot.lane.b32.xlu1 %v22_v1, %s168_s11  ;;  %38 = vrot.lane.b32.xlu0 %v22_v1, %s169_s12  ;;  %vm70_vm6 = vcmp.lt.s32.totalorder %v24_v3, 16  ;;  %vm32_vm7 = vcmp.ge.s32.totalorder %v24_v3, 16  ;;  %vm83_vm8 = vcmp.lt.s32.totalorder %v24_v3, 112  ;;  %p144_p5 = scmp.ne.s32.totalorder %s109_s15, %s143_s16  ;;  %p149_p7 = scmp.lt.s32.totalorder %s143_s16, %s143_s16 }
  0x13   :  { %v27_v6 = vand.u32 15, %v25_v4  ;;  %vm28_vm2 = vcmp.ne.s32.totalorder %v26_v5, 0  ;;  %vm30_vm4 = vcmp.ne.s32.totalorder %v26_v5, 15  ;;  %vm35_vm9 = vcmp.lt.s32.totalorder %v25_v4, 240 }
  0x14   :  { %p150_p8 = por %p149_p7, %p148_p6 }
  0x15   :  { %vm29_vm3 = vcmp.ne.s32.totalorder %v27_v6, 0  ;;  %vm31_vm5 = vcmp.ne.s32.totalorder %v27_v6, 15 }
  0x16   :  { %p151_p9 = pnand %p150_p8, %p144_p5 }
  0x80   :  { %v50_v7 = vpop.permute.xlu1 %49  ;;  %v37_v8 = vpop.permute.xlu0 %36 }
  0x84   :  { %v52_v9 = vpop.permute.xlu1 %51  ;;  %v39_v10 = vpop.permute.xlu0 %38 }
  0x85   :  { %v54_v11 = vsel %vm53_vm0, %v50_v7, %v52_v9  ;;  %v55_v12 = vsel %vm53_vm0, %v52_v9, %v50_v7  ;;  %v41_v13 = vsel %vm40_vm1, %v37_v8, %v39_v10  ;;  %v42_v14 = vsel %vm40_vm1, %v39_v10, %v37_v8 }
  0x86   :  { %v47_v15 = vsel %vm28_vm2, %v42_v14, 0.0  ;;  %v48_v16 = vsel %vm29_vm3, %v41_v13, 0.0  ;;  %v60_v19 = vsel %vm30_vm4, %v54_v11, 0.0  ;;  %v61_v20 = vsel %vm31_vm5, %v55_v12, 0.0 }
  0x87   :  { %v62_v17 = vadd.f32 %v47_v15, %v21_v0  ;;  %v63_v18 = vadd.f32 %v48_v16, %v22_v1 }
  0x89   :  { %v64_v21 = vadd.f32 %v62_v17, %v60_v19  ;;  %v65_v22 = vadd.f32 %v63_v18, %v61_v20 }
  0x8b   :  { %66 = vrot.lane.b32.xlu0 %v64_v21, %s170_s0  ;;  %68 = vrot.lane.b32.xlu1 %v65_v22, %s170_s0 }
  0x8f   :  { %79 = vrot.lane.b32.xlu0 %v64_v21, %s171_s13  ;;  %81 = vrot.lane.b32.xlu1 %v65_v22, %s171_s13 }
  0xfd   :  { %v67_v23 = vpop.permute.xlu0 %66  ;;  %v69_v24 = vpop.permute.xlu1 %68 }
  0xfe   :  { %v72_v25 = vsel %vm70_vm6, %v69_v24, %v67_v23  ;;  %v71_v26 = vsel %vm70_vm6, %v67_v23, %v69_v24 }
  0xff   :  { %v77_v27 = vsel %vm32_vm7, %v72_v25, 0.0  ;;  %v93_v32 = vadd.f32 %v71_v26, %v65_v22 }
 0x100   :  { %v92_v28 = vadd.f32 %v77_v27, %v64_v21 }
 0x101   :  { %v80_v29 = vpop.permute.xlu0 %79  ;;  %v82_v30 = vpop.permute.xlu1 %81 }
 0x102   :  { %v84_v33 = vsel %vm83_vm8, %v80_v29, %v82_v30  ;;  %v85_v34 = vsel %vm83_vm8, %v82_v30, %v80_v29 }
 0x103   :  { %v91_v36 = vsel %vm35_vm9, %v85_v34, 0.0  ;;  %v94_v37 = vadd.f32 %v92_v28, %v84_v33 }
 0x104   :  { %v95_v38 = vadd.f32 %v93_v32, %v91_v36 }
 0x105   :  { %v98_v39 = vsub.f32 %v96_v31, %v94_v37 }
 0x106   :  { %v99_v40 = vsub.f32 %v97_v35, %v95_v38 }
 0x107   :  { %100 = vst [vmem:[#allocation5] sm:$0xff] %v98_v39 }
 0x108   :  { %101 = vst [vmem:[#allocation5 + $0x8] sm:$0xff] %v99_v40 }
 0x109   :  { %154 = shalt.err (!%p151_p9)
}
 0x10a   :  { %111 = dma.vmem_to_hbm [thread:$0]  %s109_s15, 256, %s190_s1, [#allocation4]  }
 0x10b   :  { %165 = dma.done.wait [#allocation4], 256  }
 0x10c   :  { %166 = vsyncadd [#allocation4], 4294967040 }
 0x10d   :  { %115 = vsyncpa [#allocation3], 1 }
 0x10e   :  { %116 = vsyncpa [#allocation4], 1 }

</bundles_post_ra>
